<compile_context>
chip_gen: v6e
topology: v6e:2x2x1
jax: 0.10.0
libtpu: 0.0.40
codegen_flags: <defaults>
</compile_context>

<pallas_src>
import functools
import math

import jax
import jax.numpy as jnp
from jax.experimental import pallas as pl
from jax.experimental.pallas import tpu as pltpu


# ----------------------------------------------------------------------------
# Parameter / buffer setup (mirrors _create_embedding exactly, including the
# quirk that for even `channels` all features encode the y direction).
# NOTE: like the PyTorch module, H==1 or W==1 divides by zero (inf/NaN).
# ----------------------------------------------------------------------------
def make_positional_embedding(channels, height, width, temperature=10000.0):
    y_pos = jnp.arange(height, dtype=jnp.float32) / float(height - 1)
    x_pos = jnp.arange(width, dtype=jnp.float32) / float(width - 1)

    emb = jnp.zeros((channels, height, width), dtype=jnp.float32)

    features_per_dim = channels // 2
    if features_per_dim < 1:
        features_per_dim = 1
    freq_bands = jnp.exp(
        jnp.linspace(0.0, math.log(temperature), features_per_dim)
    )
    for feat_idx in range(features_per_dim):
        if feat_idx * 2 >= channels:
            break
        freq = freq_bands[feat_idx]
        y_sin = jnp.sin(y_pos * freq)  # [H]
        y_cos = jnp.cos(y_pos * freq)  # [H]
        emb = emb.at[feat_idx * 2].set(
            jnp.broadcast_to(y_sin[:, None], (height, width))
        )
        if feat_idx * 2 + 1 < channels:
            emb = emb.at[feat_idx * 2 + 1].set(
                jnp.broadcast_to(y_cos[:, None], (height, width))
            )

    x_offset = features_per_dim * 2
    remaining_features = (channels - x_offset) // 2
    if remaining_features > 0:
        freq_bands = jnp.exp(
            jnp.linspace(0.0, math.log(temperature), remaining_features)
        )
        for feat_idx in range(remaining_features):
            if x_offset + feat_idx * 2 >= channels:
                break
            freq = freq_bands[feat_idx]
            x_sin = jnp.sin(x_pos * freq)  # [W]
            x_cos = jnp.cos(x_pos * freq)  # [W]
            emb = emb.at[x_offset + feat_idx * 2].set(
                jnp.broadcast_to(x_sin[None, :], (height, width))
            )
            if x_offset + feat_idx * 2 + 1 < channels:
                emb = emb.at[x_offset + feat_idx * 2 + 1].set(
                    jnp.broadcast_to(x_cos[None, :], (height, width))
                )
    return emb


# ----------------------------------------------------------------------------
# Pallas kernels: per-(lane-chunk, batch) broadcast + channel concat.
# Pure data movement; no MXU/VPU work.
# ----------------------------------------------------------------------------
def _concat_kernel_aligned(x_ref, pos_ref, o_ref, *, in_channels):
    # x_ref: (C, Lblk); pos_ref: (PC, Lblk); o_ref: (C+PC, Lblk).
    # C is a multiple of the sublane packing -> both stores are unmasked.
    o_ref[:in_channels, :] = x_ref[...]
    o_ref[in_channels:, :] = pos_ref[...]


def _concat_kernel_unaligned(x_ref, pos_ref, o_ref):
    # C not a multiple of sublane packing: build the full block and do a single
    # store so only the boundary vreg is masked.
    o_ref[...] = jnp.concatenate([x_ref[...], pos_ref[...]], axis=0)


# ----------------------------------------------------------------------------
# Generation-aware budgeting helpers.
# ----------------------------------------------------------------------------
def _vmem_capacity_bytes():
    """Best-effort VMEM capacity query; conservative (v7x-class) on failure."""
    try:
        info = pltpu.get_tpu_info()
        cap = getattr(info, "vmem_capacity_bytes", None)
        if cap:
            return int(cap)
    except Exception:
        pass
    return 64 << 20  # conservative: assume the smallest (v7x-class) VMEM


def _choose_lane_block(L_pad, out_sublanes, itemsize, target_buf_bytes):
    """Largest lane block that (a) is a 128-multiple divisor of L_pad, (b) keeps
    the output slab under target_buf_bytes, and (c) leaves >= 2 lane blocks
    whenever L_pad >= 256 so the 'parallel' lane axis can be sharded across
    both v7x TensorCores.  L_pad is a multiple of 128 (wrapper pads)."""
    max_lanes = max(
        128, (target_buf_bytes // (out_sublanes * itemsize)) // 128 * 128
    )
    if L_pad >= 256:
        max_lanes = min(max_lanes, L_pad // 2)
    best = 128
    d = 128
    limit = min(L_pad, max_lanes)
    while d <= limit:
        if L_pad % d == 0:
            best = d
        d += 128
    return best


def spatial_positional_embedding(x, pos_emb):
    """x: [B, C, H, W]; pos_emb: [PC, PH, PW] -> [B, C+PC, H, W]."""
    B, C, H, W = x.shape
    PC, PH, PW = pos_emb.shape
    if (PH, PW) != (H, W):
        # TODO(synk): PyTorch uses F.interpolate(bilinear, align_corners=False);
        # this resize is glue done outside the kernel (not bit-exact when
        # downsampling) and is not the hot path.
        pos_emb = jax.image.resize(pos_emb, (PC, H, W), method="bilinear")
    pos_emb = pos_emb.astype(x.dtype)

    L = H * W
    x_flat = x.reshape(B, C, L)
    pos_flat = pos_emb.reshape(PC, L)

    # Keep the lane axis dense: pad L up to a multiple of 128 (sliced off after
    # the kernel) instead of ever using a non-128-multiple / full-L block.
    L_pad = pl.cdiv(L, 128) * 128
    if L_pad != L:
        pad = L_pad - L
        x_flat = jnp.pad(x_flat, ((0, 0), (0, 0), (0, pad)))
        pos_flat = jnp.pad(pos_flat, ((0, 0), (0, pad)))

    itemsize = jnp.dtype(x.dtype).itemsize

    # Generation-aware tile / VMEM budgets.
    vmem_cap = _vmem_capacity_bytes()
    small_vmem = vmem_cap <= (64 << 20)  # v7x-class (64 MiB physical per TC)
    target_buf = (4 << 20) if small_vmem else (8 << 20)  # bigger tiles on v5e/v6e
    vmem_cap_limit = (36 << 20) if small_vmem else (64 << 20)

    lane_blk = _choose_lane_block(L_pad, C + PC, itemsize, target_buf)
    n_lane = L_pad // lane_blk

    # Per-step footprint: x + pos + out blocks, double buffered by Pallas.
    step_bytes = 2 * (C + PC) * lane_blk * itemsize
    vmem_limit = int(min(max(2 * step_bytes + (8 << 20), 32 << 20),
                         vmem_cap_limit))

    # Sublane packing: 8 rows/vreg for 32-bit, 16 for bf16, 32 for int8/fp8.
    sub_pack = 8 * max(1, 4 // itemsize)
    if C % sub_pack == 0:
        kernel = functools.partial(_concat_kernel_aligned, in_channels=C)
    else:
        kernel = _concat_kernel_unaligned

    out_flat = pl.pallas_call(
        kernel,
        out_shape=jax.ShapeDtypeStruct((B, C + PC, L_pad), x.dtype),
        grid_spec=pltpu.PrefetchScalarGridSpec(
            num_scalar_prefetch=0,
            # Batch innermost: the pos block index (0, l) is constant across
            # consecutive batch steps, so its DMA is issued once per lane chunk.
            grid=(n_lane, B),
            in_specs=[
                # squeezed batch dim (None) -> kernel sees (C, lane_blk)
                pl.BlockSpec((None, C, lane_blk), lambda l, b: (b, 0, l)),
                # positional-embedding chunk (constant over the batch axis)
                pl.BlockSpec((PC, lane_blk), lambda l, b: (0, l)),
            ],
            out_specs=pl.BlockSpec(
                (None, C + PC, lane_blk), lambda l, b: (b, 0, l)
            ),
        ),
        compiler_params=pltpu.CompilerParams(
            # lane axis shardable across cores; batch "arbitrary" keeps the
            # pos-DMA dedup within each core's contiguous run.
            dimension_semantics=("parallel", "arbitrary"),
            vmem_limit_bytes=vmem_limit,
        ),
    )(x_flat, pos_flat)

    if L_pad != L:
        out_flat = out_flat[:, :, :L]
    return out_flat.reshape(B, C + PC, H, W)


# ----------------------------------------------------------------------------
# Reference (pure JAX) for verification.
# ----------------------------------------------------------------------------
def reference_forward(x, pos_emb):
    B = x.shape[0]
    pe = jnp.broadcast_to(pos_emb[None], (B,) + pos_emb.shape).astype(x.dtype)
    return jnp.concatenate([x, pe], axis=1)


if __name__ == "__main__":
    # Small shapes consistent with the module's forward: x is [B, C, H, W],
    # module instantiated with matching height/width so no interpolation.
    B, C, H, W = 2, 4, 16, 16
    POS_CHANNELS = 16
    TEMPERATURE = 10000.0

    key = jax.random.PRNGKey(0)
    x = jax.random.normal(key, (B, C, H, W), dtype=jnp.float32)

    pos_emb = make_positional_embedding(POS_CHANNELS, H, W, TEMPERATURE)

    out = spatial_positional_embedding(x, pos_emb)
    out = jax.block_until_ready(out)

    ref = reference_forward(x, pos_emb)
    assert out.shape == (B, C + POS_CHANNELS, H, W), out.shape
    assert out.dtype == x.dtype
    assert jnp.allclose(out, ref, atol=0.0, rtol=0.0), "mismatch vs reference"

    print("KERNEL_OK")
</pallas_src>

<mosaic_0001>
module attributes {stable_mosaic.version = 11 : i64} {
  func.func @_concat_kernel_unaligned(%arg0: i32, %arg1: i32, %arg2: memref<1x4x128xf32, #tpu.memory_space<vmem>>, %arg3: memref<16x128xf32, #tpu.memory_space<vmem>>, %arg4: memref<1x20x128xf32, #tpu.memory_space<vmem>>) attributes {dimension_semantics = [#tpu.dimension_semantics<parallel>, #tpu.dimension_semantics<arbitrary>], iteration_bounds = array<i64: 2, 2>, scalar_prefetch = 0 : i64, scratch_operands = 0 : i64, tpu.core_type = #tpu.core_type<tc>, window_params = [{transform_indices = @transform_0, window_bounds = array<i64: 1, 4, 128>}, {transform_indices = @transform_1, window_bounds = array<i64: 16, 128>}, {transform_indices = @transform_2, window_bounds = array<i64: 1, 20, 128>}]} {
    %c0 = arith.constant 0 : index
    %c0_0 = arith.constant 0 : index
    %c0_1 = arith.constant 0 : index
    %0 = vector.load %arg2[%c0, %c0_0, %c0_1] : memref<1x4x128xf32, #tpu.memory_space<vmem>>, vector<1x4x128xf32>
    %1 = vector.shape_cast %0 : vector<1x4x128xf32> to vector<4x128xf32>
    %c0_2 = arith.constant 0 : index
    %c0_3 = arith.constant 0 : index
    %2 = vector.load %arg3[%c0_2, %c0_3] : memref<16x128xf32, #tpu.memory_space<vmem>>, vector<16x128xf32>
    %3 = tpu.concatenate %1, %2 in 0 : vector<4x128xf32>, vector<16x128xf32> -> vector<20x128xf32>
    %c0_4 = arith.constant 0 : index
    %c0_5 = arith.constant 0 : index
    %c0_6 = arith.constant 0 : index
    %4 = vector.load %arg4[%c0_4, %c0_5, %c0_6] : memref<1x20x128xf32, #tpu.memory_space<vmem>>, vector<1x20x128xf32>
    %5 = vector.shape_cast %4 : vector<1x20x128xf32> to vector<20x128xf32>
    %6 = vector.shape_cast %3 : vector<20x128xf32> to vector<1x20x128xf32>
    tpu.vector_store %arg4[%c0_4, %c0_5, %c0_6], %6 {strides = array<i32>} : memref<1x20x128xf32, #tpu.memory_space<vmem>>, vector<1x20x128xf32>,
    return
  }
  func.func @transform_0(%arg0: i32, %arg1: i32) -> (i32, i32, i32) {
    %c0_i32 = arith.constant 0 : i32
    %c0_i32_0 = arith.constant 0 : i32
    return %arg1, %c0_i32, %arg0 : i32, i32, i32
  }
  func.func @transform_1(%arg0: i32, %arg1: i32) -> (i32, i32) {
    %c0_i32 = arith.constant 0 : i32
    %c0_i32_0 = arith.constant 0 : i32
    return %c0_i32, %arg0 : i32, i32
  }
  func.func @transform_2(%arg0: i32, %arg1: i32) -> (i32, i32, i32) {
    %c0_i32 = arith.constant 0 : i32
    %c0_i32_0 = arith.constant 0 : i32
    return %arg1, %c0_i32, %arg0 : i32, i32, i32
  }
}

</mosaic_0001>

<bundles_post_ra>
// kernel: tpu_custom_call.1
= control target key start
LH: loop header
LB: loop body
LE: loop exit
PB: predicated region body
PF: predicated region fallthrough
CT: control target
= control target key end

     0   :  { %s889_s0 = inlined_call_operand.hbm [shape: f32[2,4,256], index: 0, kind: input, shape index: {}]   ;;  %s890_s1 = inlined_call_operand.hbm [shape: f32[16,256], index: 1, kind: input, shape index: {}]   ;;  %s891_s2 = inlined_call_operand.vmem [shape: f32[2,20,256], index: 2, kind: output, shape index: {}]  }
   0x1   :  { %895 = sst [smem:[#allocation11_spill]] %s889_s0 }
   0x2   :  { %7 = vsyncpa [#allocation3], 0 }
   0x3   :  { %9 = vsyncpa [#allocation3 + $0x1], 0 }
   0x4   :  { %10 = vsyncpa [#allocation5], 0 }
   0x5   :  { %12 = vsyncpa [#allocation5 + $0x1], 0  ;;  %s672_s9 = smov 0   ;;  %s674_s10 = smov 0  }
   0x6   :  { %s676_s11 = smov 0   ;;  %s678_s12 = smov 0  }
   0x7   :  { %s680_s13 = smov 0   ;;  %s682_s14 = smov 0  }
   0x8   :  { %s684_s15 = smov 0   ;;  %s686_s16 = smov 0  }
   0x9   :  { %s688_s17 = smov 0   ;;  %s690_s18 = smov 0  }
   0xa   :  { %s692_s19 = smov 0  }
   0xb LB: > { %s380_s20 = sadd.s32 4294967295, %s650_s19   ;;  %s27_s21 = sadd.s32 1, %s642_s17  ;;  %s650_s19 = sphi %s692_s19, %s18_s19   ;;  %s646_s18 = sphi %s690_s18, %s921_s18   ;;  %s642_s17 = sphi %s688_s17, %s920_s17   ;;  %s638_s16 = sphi %s686_s16, %s919_s16   ;;  %s634_s15 = sphi %s684_s15, %s918_s15   ;;  %s630_s14 = sphi %s682_s14, %s917_s14   ;;  %s626_s13 = sphi %s680_s13, %s916_s13   ;;  %s622_s12 = sphi %s678_s12, %s915_s12   ;;  %s618_s11 = sphi %s676_s11, %s914_s11   ;;  %s614_s10 = sphi %s674_s10, %s913_s10   ;;  %s610_s9 = sphi %s672_s9, %s912_s9  }
   0xc   : > { %p28_p0 = scmp.ge.s32.totalorder %s27_s21, 2  ;;  %s30_s22 = sadd.s32 1, %s646_s18 }
   0xd   : > { %s39_s23 = sadd.s32 1, %s630_s14  ;;  %p46_p1 = scmp.ne.s32.totalorder %s630_s14, %s626_s13 }
   0xe   : > { %s923_s21 = smov (%p28_p0, %s27_s21), 0  ;;  %s925_s22 = smov (!%p28_p0, %s30_s22), %s646_s18 }
   0xf   : > { %896 = sst [smem:[#allocation9_spill]] %s923_s21  ;;  %s34_s24 = ssub.s32 %s642_s17, %s923_s21 }
  0x10   : > { %p47_p2 = scmp.eq.s32.totalorder %s650_s19, 0  ;;  %p32_p3 = scmp.ge.s32.totalorder %s925_s22, 2 }
  0x11   : > { %p52_p4 = scmp.ne.s32.totalorder %s626_s13, %s622_s12  ;;  %p747_p6 = scmp.eq.s32.totalorder %s380_s20, 0 }
  0x12   : > { %p743_p5 = por %p47_p2, %p46_p1  ;;  %s927_s22 = smov (%p32_p3, %s925_s22), 0 }
  0x13   : > { %899 = sst [smem:[#allocation10_spill]] %s927_s22  ;;  %p755_p7 = por %p747_p6, %p52_p4 }
  0x14   : > { %s65_s28 = sadd.s32 1, %s618_s11  ;;  %s35_s29 = ssub.s32 %s646_s18, %s927_s22 }
  0x15   : > { %p72_p8 = scmp.ne.s32.totalorder %s618_s11, %s614_s10  ;;  %s36_s30 = sor.u32 %s35_s29, %s34_s24 }
  0x16   : > { %p63_p9 = scmp.eq.s32.totalorder %s35_s29, 0  ;;  %p37_p10 = scmp.eq.s32.totalorder %s36_s30, 0 }
  0x17   : > { %p766_p11 = por %p72_p8, %p47_p2  ;;  %p78_p12 = scmp.ne.s32.totalorder %s614_s10, %s610_s9 }
  0x18   : > { %s771_s4 = scalar_select %p63_p9, %s618_s11, %s65_s28  }
  0x19   : > { %s774_s5 = scalar_select %p37_p10, %s630_s14, %s39_s23  }
  0x1a   : > { %p104_p13 = scmp.eq.s32.totalorder %s380_s20, 3  ;;  %p408_p0 = scmp.lt.s32.totalorder %s650_s19, 4 }
  0x1b   : > { %p781_p3 = por %p78_p12, %p747_p6  ;;  %s130_s8 = sand.u32 1, %s630_s14  }
  0x1c   : > { %p788_p2 = por %p104_p13, %p46_p1  ;;  %s385_s12 = sshll.u32 %s642_s17, 1 }
  0x1d   : > { %s902_s6 = scalar_select %p781_p3, 1, 0 }
  0x1e   : > { %s903_s7 = scalar_select %p788_p2, 1, 0 }
  0x1f   : > { %s384_s23 = sshll.u32 %s130_s8, 2  ;;  %s139_s24 = sadd.s32 %s646_s18, %s385_s12 }
  0x20   : > { %s386_s28 = sshll.u32 %s139_s24, 6  ;;  %s134_s9 = scalar_lea.vmem [#allocation2], %s384_s23 }
  0x21   : > { %s143_s29 = sshll.u32 %s134_s9, 4  ;;  %s904_s0 = sld [smem:[#allocation11_spill]]  ;;  %s144_s29 = int_to_ptr.vmem [resolvable:$true] %s143_s29 }
  0x22   : > { %p802_p4 = pnand %p408_p0, %p743_p5  ;;  %p810_p1 = pnand %p408_p0, %p766_p11 }
  0x23   : > { %p389_p6 = scmp.ge.s32.totalorder %s650_s19, 1  ;;  %p168_p8 = scmp.lt.s32.totalorder %s650_s19, 5 }
  0x24   : > { %s131_s12 = scalar_lea.sflag [#allocation3], %s130_s8  ;;  %p502_p9 = pneg %p802_p4 }
  0x25   : > { %s513_s23 = scalar_lea.vmem %s144_s29, 64  ;;  %s652_s25 = smov [#allocation2]  }
  0x26   : > { %p514_p10 = scmp.ne.s32.totalorder %s144_s29, %s513_s23  ;;  %s518_s24 = sshll.u32 %s652_s25, 4  ;;  %s519_s24 = int_to_ptr.vmem [resolvable:$false] %s518_s24 }
  0x27   : > { %s141_s26 = scalar_lea.hbm %s904_s0, %s386_s28  ;;  %s520_s28 = scalar_lea.vmem %s519_s24, 128 }
  0x28   : > { %p516_p12 = pnand %p514_p10, %p502_p9  ;;  %p521_p5 = scmp.lt.s32.totalorder %s144_s29, %s519_s24 }
  0x29   : > { %p522_p2 = scmp.lt.s32.totalorder %s520_s28, %s513_s23 }
  0x2a   : > { %p517_p13 = pneg %p516_p12 }
  0x2b   : > { %p523_p3 = por %p522_p2, %p521_p5 }
  0x2d   : > { %p524_p11 = pnand %p523_p3, %p517_p13 }
  0x2f   : > { %527 = shalt.err (!%p524_p11)
}
  0x30   : > { %404 = dma.hbm_to_vmem [thread:$0]  (!%p802_p4), %s141_s26, 64, %s144_s29, %s131_s12  }
  0x31   : > { %p824_p0 = pnand %p389_p6, %p168_p8  ;;  %s150_s8 = sand.u32 1, %s618_s11  }
  0x32   : > { %s387_s9 = sshll.u32 %s150_s8, 4  ;;  %s388_s20 = sshll.u32 %s646_s18, 7 }
  0x33   : > { %s159_s25 = scalar_lea.hbm %s890_s1, %s388_s20  ;;  %s154_s22 = scalar_lea.vmem [#allocation4], %s387_s9 }
  0x34   : > { %s160_s24 = sshll.u32 %s154_s22, 4  ;;  %s151_s28 = scalar_lea.sflag [#allocation5], %s150_s8  ;;  %s161_s24 = int_to_ptr.vmem [resolvable:$true] %s160_s24 }
  0x35   : > { %p530_p3 = pneg %p810_p1  ;;  %s541_s29 = scalar_lea.vmem %s161_s24, 256 }
  0x36   : > { %p542_p2 = scmp.ne.s32.totalorder %s161_s24, %s541_s29  ;;  %s653_s26 = smov [#allocation4]  }
  0x37   : > { %s546_s12 = sshll.u32 %s653_s26, 4  ;;  %s547_s12 = int_to_ptr.vmem [resolvable:$false] %s546_s12 }
  0x38   : > { %p544_p4 = pnand %p542_p2, %p530_p3  ;;  %s548_s0 = scalar_lea.vmem %s547_s12, 512 }
  0x39   : > { %p549_p8 = scmp.lt.s32.totalorder %s161_s24, %s547_s12  ;;  %p550_p9 = scmp.lt.s32.totalorder %s548_s0, %s541_s29 }
  0x3a   : > { %p545_p6 = pneg %p544_p4 }
  0x3b   : > { %p551_p10 = por %p550_p9, %p549_p8 }
  0x3d   : > { %p552_p12 = pnand %p551_p10, %p545_p6 }
  0x3f   : > { %555 = shalt.err (!%p552_p12)
}
  0x40   : > { %s654_s20 = smov 256   ;;  %s655_s9 = smov 128  }
  0x41   : > { %s656_s30 = smov 8   ;;  %172 = sbr.rel (%p824_p0) target bundleno = 89 (0x59), region = 28 }
  0x42   : > { %407 = dma.hbm_to_vmem [thread:$0]  (!%p810_p1), %s159_s25, 256, %s161_s24, %s151_s28, %s654_s20, %s655_s9, %s656_s30  }
  0x43   : > { %s174_s8 = sand.u32 (!%p824_p0), 1, %s626_s13  }
  0x44   : > { %s390_s23 = sshll.u32 (!%p824_p0), %s174_s8, 2  ;;  %s175_s22 = scalar_lea.sflag (!%p824_p0), [#allocation3], %s174_s8 }
  0x45   : > { %s178_s26 = scalar_lea.vmem (!%p824_p0), [#allocation2], %s390_s23 }
  0x46   : > { %601 = dma.done.wait (%p755_p7), %s175_s22, 64  }
  0x47   : > { %603 = vsyncadd (%p755_p7), %s175_s22, 4294967232  ;;  %s183_s0 = sand.u32 1, %s614_s10   ;;  %p908_p1 = scmp.ne.s32.totalorder %s902_s6, 0 }
  0x48   : > { %s391_s29 = sshll.u32 %s183_s0, 4  ;;  %s184_s21 = scalar_lea.sflag [#allocation5], %s183_s0 }
  0x49   : > { %s187_s25 = scalar_lea.vmem [#allocation4], %s391_s29 }
  0x4a   : > { %605 = dma.done.wait (%p908_p1), %s184_s21, 256  }
  0x4b   : > { %607 = vsyncadd (%p908_p1), %s184_s21, 4294967040  ;;  %s395_s3 = smul.u32 24, %s174_s8  ;;  %v212_v0 = vld [vmem:[%s178_s26] sm:$0xf]  ;;  %v213_v1 = vld [vmem:[%s187_s25] sm:$0xff]  ;;  %vm217_vm0 = vcmask 1043456  }
  0x4c   : > { %v214_v2 = vld [vmem:[%s187_s25 + $0x8] sm:$0xff]  ;;  %v218_v3 = vrot.slane %v213_v1, 4  ;;  %p909_p7 = scmp.ne.s32.totalorder %s903_s7, 0 }
  0x4d   : > { %v219_v4 = vrot.slane %v214_v2, 4  ;;  %s211_s27 = scalar_lea.vmem [#allocation6], %s395_s3  ;;  %s396_s6 = smul.u32 (%p909_p7), 6, %s634_s15 }
  0x4e   : > { %v224_v5 = vsel %vm217_vm0, %v212_v0, %v218_v3  ;;  %234 = sbr.rel (!%p909_p7) target bundleno = 89 (0x59), region = 40 }
  0x4f   : > { %v220_v6 = vsel %vm217_vm0, %v218_v3, %v219_v4  ;;  %227 = vst [vmem:[%s211_s27 + $0x10] sm:$0xf] %v219_v4  ;;  %225 = vst [vmem:[%s211_s27] sm:$0xff] %v224_v5  ;;  %s236_s24 = sadd.s32 (%p909_p7), %s638_s16, %s396_s6 }
  0x50   : > { %226 = vst [vmem:[%s211_s27 + $0x8] sm:$0xff] %v220_v6  ;;  %s392_s28 = sshll.u32 (%p909_p7), %s236_s24, 3 }
  0x51   : > { %s238_s9 = scalar_lea.vmem (%p909_p7), %s891_s2, %s392_s28 }
  0x56   : > { %v271_v7 = vld [vmem:[%s211_s27] sm:$0xff]  ;;  %v275_v9 = vld [vmem:[%s211_s27 + $0x10] sm:$0xff] }
  0x57   : > { %v273_v8 = vld [vmem:[%s211_s27 + $0x8] sm:$0xff]  ;;  %272 = vst [vmem:[%s238_s9] sm:$0xff] %v271_v7  ;;  %276 = vst [vmem:[%s238_s9 + $0x20] sm:$0xff] %v275_v9 }
  0x58   : > { %274 = vst [vmem:[%s238_s9 + $0x10] sm:$0xff] %v273_v8 }
  0x59 PF: > { %s18_s19 = sadd.s32 1, %s650_s19   ;;  %s910_s7 = sld [smem:[#allocation9_spill]] }
  0x5a   : > { %p15_p13 = scmp.ge.s32.totalorder %s18_s19, 6   ;;  %s911_s30 = sld [smem:[#allocation10_spill]] }
  0x5b   : > { %s912_s9 = smov %s614_s10  ;;  %s913_s10 = smov %s618_s11 }
  0x5c   : > { %s914_s11 = smov %s771_s4  ;;  %s915_s12 = smov %s626_s13 }
  0x5d   : > { %s916_s13 = smov %s630_s14  ;;  %s917_s14 = smov %s774_s5 }
  0x5e   : > { %s918_s15 = smov %s642_s17  ;;  %s919_s16 = smov %s646_s18 }
  0x5f   : > { %s920_s17 = smov %s910_s7  ;;  %17 = sbr.rel (!%p15_p13) target bundleno = 11 (0xb), region = 119 }
  0x60   : > { %s921_s18 = smov %s911_s30 }
  0x64   :  { %292 = vsyncpa [#allocation3], 1 }
  0x65   :  { %294 = vsyncpa [#allocation3 + $0x1], 1 }
  0x66   :  { %295 = vsyncpa [#allocation5], 1 }
  0x67   :  { %297 = vsyncpa [#allocation5 + $0x1], 1 }

</bundles_post_ra>
